<compile_context>
chip_gen: v6e
topology: v6e:2x2x1
jax: 0.10.0
libtpu: 0.0.40
codegen_flags: <defaults>
</compile_context>

<pallas_src>
import jax
import jax.numpy as jnp
from jax.experimental import pallas as pl
from jax.experimental.pallas import tpu as pltpu


def _round_up(n, m):
    return ((n + m - 1) // m) * m


def mlp_kernel(x_ref, w0_ref, b0_ref, w1_ref, b1_ref, o_ref):
    # ReLU precedes every Linear (final_relu=False => no trailing ReLU).
    h = jnp.maximum(x_ref[...], 0.0)
    # Linear 0: h @ W0 + b0 (MXU matmul, fp32 accumulate; bias add stays fp32).
    # Operands are cast to the weight dtype (bf16 on the fast path).
    h = jnp.dot(h.astype(w0_ref.dtype), w0_ref[...],
                preferred_element_type=jnp.float32) + b0_ref[...]
    # ReLU before the last Linear.
    h = jnp.maximum(h, 0.0)
    # Linear 1 (last_linear): no trailing ReLU since final_relu=False.
    h = jnp.dot(h.astype(w1_ref.dtype), w1_ref[...],
                preferred_element_type=jnp.float32) + b1_ref[...]
    o_ref[...] = h.astype(o_ref.dtype)


def mlp_forward(x, w0, b0, w1, b1, *, tb=None, use_bf16=False):
    """Fused MLP forward.

    x : (B, D0) fp32
    w0: (D0, D1), b0: (D1,) or (1, D1)
    w1: (D1, D2), b1: (D2,) or (1, D2)
    Weights are pre-transposed (in, out): kernel computes h @ W + b.
    """
    B, D0 = x.shape
    D1 = w0.shape[1]
    D2 = w1.shape[1]
    b0 = b0.reshape(1, D1)
    b1 = b1.reshape(1, D2)

    # Lane-pad feature dims to multiples of 128 (exact: padded rows/cols are 0).
    D0p, D1p, D2p = (_round_up(d, 128) for d in (D0, D1, D2))

    # Batch tile: big tiles for large batches (feeds the MXU M-dim, amortizes
    # the ~0.35us/grid-step overhead); a single sublane-aligned tile for small
    # batches.  The batch is zero-padded to a multiple of tb.
    if tb is None:
        if B >= 1024:
            tb = 512
        elif B >= 256:
            tb = 256
        else:
            tb = _round_up(max(B, 8), 8)
    Bp = _round_up(B, tb)

    xp = jnp.pad(x, ((0, Bp - B), (0, D0p - D0)))
    w0p = jnp.pad(w0, ((0, D0p - D0), (0, D1p - D1)))
    b0p = jnp.pad(b0, ((0, 0), (0, D1p - D1)))
    w1p = jnp.pad(w1, ((0, D1p - D1), (0, D2p - D2)))
    b1p = jnp.pad(b1, ((0, 0), (0, D2p - D2)))

    if use_bf16:
        # bf16 into the MXU (v6e/v7x peak; halves weight DMA bytes).
        # Accumulation is still fp32 via preferred_element_type; bias/ReLU fp32.
        w0p = w0p.astype(jnp.bfloat16)
        w1p = w1p.astype(jnp.bfloat16)

    # VMEM budget: double-buffered x/out tiles + resident weights + biases.
    w_item = 2 if use_bf16 else 4
    vmem_need = (2 * tb * D0p * 4
                 + 2 * tb * D2p * 4
                 + 2 * (D0p * D1p + D1p * D2p) * w_item
                 + 2 * (D1p + D2p) * 4)
    # Clamp so large-tb configs still fit v7x's 64 MiB physical VMEM.
    vmem_limit = int(min(max(vmem_need * 3 // 2, 32 * 1024 * 1024),
                         64 * 1024 * 1024))

    out_p = pl.pallas_call(
        mlp_kernel,
        out_shape=jax.ShapeDtypeStruct((Bp, D2p), x.dtype),
        grid_spec=pltpu.PrefetchScalarGridSpec(
            num_scalar_prefetch=0,
            grid=(Bp // tb,),
            in_specs=[
                pl.BlockSpec((tb, D0p), lambda i: (i, 0)),   # x tile over batch
                # Weights/biases fully resident (constant index_map).
                # TODO(synk): for large layer_sizes (D ~ 2-4k+), switch to a
                # K-tiled grid axis with a VMEM accumulator instead of resident
                # weights, and single-buffer the weight specs on v7x.
                pl.BlockSpec((D0p, D1p), lambda i: (0, 0)),  # W0
                pl.BlockSpec((1, D1p), lambda i: (0, 0)),    # b0
                pl.BlockSpec((D1p, D2p), lambda i: (0, 0)),  # W1
                pl.BlockSpec((1, D2p), lambda i: (0, 0)),    # b1
            ],
            out_specs=pl.BlockSpec((tb, D2p), lambda i: (i, 0)),  # lane-dense
        ),
        compiler_params=pltpu.CompilerParams(
            dimension_semantics=("parallel",),
            vmem_limit_bytes=vmem_limit,
        ),
    )(xp, w0p, b0p, w1p, b1p)

    # Slice off batch padding and lane padding of the output.
    return out_p[:B, :D2]


def reference_mlp(x, w0, b0, w1, b1):
    h = jnp.maximum(x, 0.0)
    h = h @ w0 + b0.reshape(1, -1)
    h = jnp.maximum(h, 0.0)
    return h @ w1 + b1.reshape(1, -1)


if __name__ == "__main__":
    # MLP(layer_sizes=[32, 64, 16], final_relu=False)
    D0, D1, D2 = 32, 64, 16
    B = 16  # small batch

    key = jax.random.PRNGKey(0)
    kx, kw0, kb0, kw1, kb1 = jax.random.split(key, 5)

    x = jax.random.normal(kx, (B, D0), dtype=jnp.float32)

    # Deterministic synthetic parameters (nn.Linear: W (out,in), b (out,));
    # stored transposed as (in, out) for the kernel's h @ W convention.
    bound0 = 1.0 / jnp.sqrt(D0)
    w0 = jax.random.uniform(kw0, (D0, D1), minval=-bound0, maxval=bound0,
                            dtype=jnp.float32)
    b0 = jax.random.uniform(kb0, (1, D1), minval=-bound0, maxval=bound0,
                            dtype=jnp.float32)
    bound1 = 1.0 / jnp.sqrt(D1)
    w1 = jax.random.uniform(kw1, (D1, D2), minval=-bound1, maxval=bound1,
                            dtype=jnp.float32)
    b1 = jax.random.uniform(kb1, (1, D2), minval=-bound1, maxval=bound1,
                            dtype=jnp.float32)

    ref = reference_mlp(x, w0, b0, w1, b1)

    # fp32 path: exact vs reference.
    out = jax.block_until_ready(mlp_forward(x, w0, b0, w1, b1))
    assert out.shape == (B, D2)
    assert jnp.allclose(out, ref, atol=1e-5, rtol=1e-5)

    # bf16-operand fast path (v6e/v7x MXU): loose tolerance, fp32 accumulate.
    out_bf16 = jax.block_until_ready(mlp_forward(x, w0, b0, w1, b1,
                                                 use_bf16=True))
    assert out_bf16.shape == (B, D2)
    assert jnp.allclose(out_bf16, ref, atol=3e-2, rtol=3e-2)

    print("KERNEL_OK")
</pallas_src>

<mosaic_0001>
module attributes {stable_mosaic.version = 11 : i64} {
  func.func @mlp_kernel(%arg0: i32, %arg1: memref<16x128xf32, #tpu.memory_space<vmem>>, %arg2: memref<128x128xf32, #tpu.memory_space<vmem>>, %arg3: memref<1x128xf32, #tpu.memory_space<vmem>>, %arg4: memref<128x128xf32, #tpu.memory_space<vmem>>, %arg5: memref<1x128xf32, #tpu.memory_space<vmem>>, %arg6: memref<16x128xf32, #tpu.memory_space<vmem>>) attributes {dimension_semantics = [#tpu.dimension_semantics<parallel>], iteration_bounds = array<i64: 1>, scalar_prefetch = 0 : i64, scratch_operands = 0 : i64, tpu.core_type = #tpu.core_type<tc>, window_params = [{transform_indices = @transform_0, window_bounds = array<i64: 16, 128>}, {pipeline_mode = #tpu.pipeline_mode<synchronous>, transform_indices = @transform_1, window_bounds = array<i64: 128, 128>}, {pipeline_mode = #tpu.pipeline_mode<synchronous>, transform_indices = @transform_2, window_bounds = array<i64: 1, 128>}, {pipeline_mode = #tpu.pipeline_mode<synchronous>, transform_indices = @transform_3, window_bounds = array<i64: 128, 128>}, {pipeline_mode = #tpu.pipeline_mode<synchronous>, transform_indices = @transform_4, window_bounds = array<i64: 1, 128>}, {transform_indices = @transform_5, window_bounds = array<i64: 16, 128>}]} {
    %c0 = arith.constant 0 : index
    %c0_0 = arith.constant 0 : index
    %0 = vector.load %arg1[%c0, %c0_0] : memref<16x128xf32, #tpu.memory_space<vmem>>, vector<16x128xf32>
    %cst = arith.constant 0.000000e+00 : f32
    %1 = vector.broadcast %cst : f32 to vector<16x128xf32>
    %2 = arith.maximumf %0, %1 : vector<16x128xf32>
    %c0_1 = arith.constant 0 : index
    %c0_2 = arith.constant 0 : index
    %3 = vector.load %arg2[%c0_1, %c0_2] : memref<128x128xf32, #tpu.memory_space<vmem>>, vector<128x128xf32>
    %cst_3 = arith.constant dense<0.000000e+00> : vector<16x128xf32>
    %4 = tpu.matmul %2, %3, %cst_3 {dimension_numbers = #tpu.dot_dimension_numbers<[1], [0], [0], [1], [0, 0, 1, 1], [], []>} : vector<16x128xf32>, vector<128x128xf32>, vector<16x128xf32> -> vector<16x128xf32>
    %c0_4 = arith.constant 0 : index
    %c0_5 = arith.constant 0 : index
    %5 = vector.load %arg3[%c0_4, %c0_5] : memref<1x128xf32, #tpu.memory_space<vmem>>, vector<1x128xf32>
    %6 = vector.broadcast %5 : vector<1x128xf32> to vector<16x128xf32>
    %7 = arith.addf %4, %6 : vector<16x128xf32>
    %cst_6 = arith.constant 0.000000e+00 : f32
    %8 = vector.broadcast %cst_6 : f32 to vector<16x128xf32>
    %9 = arith.maximumf %7, %8 : vector<16x128xf32>
    %c0_7 = arith.constant 0 : index
    %c0_8 = arith.constant 0 : index
    %10 = vector.load %arg4[%c0_7, %c0_8] : memref<128x128xf32, #tpu.memory_space<vmem>>, vector<128x128xf32>
    %cst_9 = arith.constant dense<0.000000e+00> : vector<16x128xf32>
    %11 = tpu.matmul %9, %10, %cst_9 {dimension_numbers = #tpu.dot_dimension_numbers<[1], [0], [0], [1], [0, 0, 1, 1], [], []>} : vector<16x128xf32>, vector<128x128xf32>, vector<16x128xf32> -> vector<16x128xf32>
    %c0_10 = arith.constant 0 : index
    %c0_11 = arith.constant 0 : index
    %12 = vector.load %arg5[%c0_10, %c0_11] : memref<1x128xf32, #tpu.memory_space<vmem>>, vector<1x128xf32>
    %13 = vector.broadcast %12 : vector<1x128xf32> to vector<16x128xf32>
    %14 = arith.addf %11, %13 : vector<16x128xf32>
    %c0_12 = arith.constant 0 : index
    %c0_13 = arith.constant 0 : index
    %15 = vector.load %arg6[%c0_12, %c0_13] : memref<16x128xf32, #tpu.memory_space<vmem>>, vector<16x128xf32>
    tpu.vector_store %arg6[%c0_12, %c0_13], %14 {strides = array<i32>} : memref<16x128xf32, #tpu.memory_space<vmem>>, vector<16x128xf32>,
    return
  }
  func.func @transform_0(%arg0: i32) -> (i32, i32) {
    %c0_i32 = arith.constant 0 : i32
    %c0_i32_0 = arith.constant 0 : i32
    return %arg0, %c0_i32 : i32, i32
  }
  func.func @transform_1(%arg0: i32) -> (i32, i32) {
    %c0_i32 = arith.constant 0 : i32
    %c0_i32_0 = arith.constant 0 : i32
    %c0_i32_1 = arith.constant 0 : i32
    return %c0_i32, %c0_i32_0 : i32, i32
  }
  func.func @transform_2(%arg0: i32) -> (i32, i32) {
    %c0_i32 = arith.constant 0 : i32
    %c0_i32_0 = arith.constant 0 : i32
    %c0_i32_1 = arith.constant 0 : i32
    return %c0_i32, %c0_i32_0 : i32, i32
  }
  func.func @transform_3(%arg0: i32) -> (i32, i32) {
    %c0_i32 = arith.constant 0 : i32
    %c0_i32_0 = arith.constant 0 : i32
    %c0_i32_1 = arith.constant 0 : i32
    return %c0_i32, %c0_i32_0 : i32, i32
  }
  func.func @transform_4(%arg0: i32) -> (i32, i32) {
    %c0_i32 = arith.constant 0 : i32
    %c0_i32_0 = arith.constant 0 : i32
    %c0_i32_1 = arith.constant 0 : i32
    return %c0_i32, %c0_i32_0 : i32, i32
  }
  func.func @transform_5(%arg0: i32) -> (i32, i32) {
    %c0_i32 = arith.constant 0 : i32
    %c0_i32_0 = arith.constant 0 : i32
    return %arg0, %c0_i32 : i32, i32
  }
}

</mosaic_0001>

<bundles_post_ra>
// kernel: tpu_custom_call.1
= control target key start
LH: loop header
LB: loop body
LE: loop exit
PB: predicated region body
PF: predicated region fallthrough
CT: control target
= control target key end

     0   :  { %10 = vsyncpa [#allocation3], 0  ;;  %s550_s0 = inlined_call_operand.hbm [shape: f32[16,128], index: 0, kind: input, shape index: {}]   ;;  %s551_s1 = inlined_call_operand.hbm [shape: f32[128,128], index: 1, kind: input, shape index: {}]   ;;  %s552_s2 = inlined_call_operand.vmem [shape: f32[1,128], index: 2, kind: input, shape index: {}]   ;;  %s553_s3 = inlined_call_operand.hbm [shape: f32[128,128], index: 3, kind: input, shape index: {}]   ;;  %s554_s4 = inlined_call_operand.vmem [shape: f32[1,128], index: 4, kind: input, shape index: {}]   ;;  %s555_s5 = inlined_call_operand.hbm [shape: f32[16,128], index: 5, kind: output, shape index: {}]  }
   0x1   :  { %11 = vsyncpa [#allocation6], 0 }
   0x2   :  { %12 = vsyncpa [#allocation4], 0  ;;  %s484_s18 = smov [#allocation5]   ;;  %s485_s20 = smov [#allocation2]  }
   0x3   :  { %s30_s19 = sshll.u32 %s484_s18, 4  ;;  %s18_s21 = sshll.u32 %s485_s20, 4  ;;  %s31_s19 = int_to_ptr.vmem [resolvable:$true] %s30_s19  ;;  %s19_s21 = int_to_ptr.vmem [resolvable:$true] %s18_s21 }
   0x4   :  { %s406_s22 = scalar_lea.vmem %s31_s19, 2048  ;;  %p411_p1 = scmp.lt.s32.totalorder %s31_s19, %s31_s19 }
   0x5   :  { %p407_p0 = scmp.ne.s32.totalorder %s31_s19, %s406_s22  ;;  %p412_p2 = scmp.lt.s32.totalorder %s406_s22, %s406_s22 }
   0x7   :  { %p413_p3 = por %p412_p2, %p411_p1 }
   0x9   :  { %p414_p4 = pnand %p413_p3, %p407_p0 }
   0xb   :  { %417 = shalt.err (!%p414_p4)
}
   0xc   :  { %s486_s23 = smov 128   ;;  %s487_s24 = smov 8  }
   0xd   :  { %36 = dma.hbm_to_vmem [thread:$0]  %s551_s1, 2048, %s31_s19, [#allocation6], %s486_s23, %s486_s23, %s487_s24  }
   0xe   :  { %s426_s27 = scalar_lea.vmem %s19_s21, 256  ;;  %p431_p6 = scmp.lt.s32.totalorder %s19_s21, %s19_s21 }
   0xf   :  { %p427_p5 = scmp.ne.s32.totalorder %s19_s21, %s426_s27  ;;  %p432_p7 = scmp.lt.s32.totalorder %s426_s27, %s426_s27 }
  0x11   :  { %p433_p8 = por %p432_p7, %p431_p6 }
  0x13   :  { %p434_p9 = pnand %p433_p8, %p427_p5 }
  0x15   :  { %437 = shalt.err (!%p434_p9)
}
  0x16   :  { %24 = dma.hbm_to_vmem [thread:$0]  %s550_s0, 256, %s19_s21, [#allocation3], %s486_s23, %s486_s23, %s487_s24  }
  0x17   :  { %s488_s30 = smov [#allocation7]  }
  0x18   :  { %s44_s6 = sshll.u32 %s488_s30, 4  ;;  %s45_s6 = int_to_ptr.vmem [resolvable:$true] %s44_s6 }
  0x19   :  { %s446_s7 = scalar_lea.vmem %s45_s6, 2048  ;;  %p451_p11 = scmp.lt.s32.totalorder %s45_s6, %s45_s6 }
  0x1a   :  { %p447_p10 = scmp.ne.s32.totalorder %s45_s6, %s446_s7  ;;  %p452_p12 = scmp.lt.s32.totalorder %s446_s7, %s446_s7 }
  0x1c   :  { %p453_p13 = por %p452_p12, %p451_p11 }
  0x1e   :  { %p454_p0 = pnand %p453_p13, %p447_p10 }
  0x20   :  { %457 = shalt.err (!%p454_p0)
}
  0x21   :  { %50 = dma.hbm_to_vmem [thread:$0]  %s553_s3, 2048, %s45_s6, [#allocation6], %s486_s23, %s486_s23, %s487_s24  }
  0x22   :  { %478 = dma.done.wait [#allocation3], 256  }
  0x23   :  { %479 = vsyncadd [#allocation3], 4294967040 }
  0x24   :  { %480 = dma.done.wait [#allocation6], 4096  }
  0x25   :  { %481 = vsyncadd [#allocation6], 4294963200  ;;  %v81_v0 = vld [vmem:[#allocation5 + $0x78] sm:$0xff]  ;;  %v80_v1 = vld [vmem:[#allocation5 + $0x70] sm:$0xff]  ;;  %s489_s11 = smov [#allocation8]  }
  0x26   :  { %322 = vmatprep.subr.mxu0 %v81_v0  ;;  %v79_v2 = vld [vmem:[#allocation5 + $0x68] sm:$0xff]  ;;  %v78_v3 = vld [vmem:[#allocation5 + $0x60] sm:$0xff]  ;;  %v62_v4 = vld [vmem:[#allocation2] sm:$0xff]  ;;  %s271_s12 = sshll.u32 %s489_s11, 4  ;;  %s272_s12 = int_to_ptr.vmem [resolvable:$true] %s271_s12 }
  0x27   :  { %323 = vmatpush3.msra.mxu0 %v81_v0  ;;  %v77_v5 = vld [vmem:[#allocation5 + $0x58] sm:$0xff]  ;;  %v64_v6 = vmax.f32 %v62_v4, 0.0  ;;  %v180_v8 = vld [vmem:[#allocation7 + $0x70] sm:$0xff]  ;;  %v179_v10 = vld [vmem:[#allocation7 + $0x68] sm:$0xff]  ;;  %p463_p2 = scmp.lt.s32.totalorder %s272_s12, %s272_s12 }
  0x28   :  { %324 = vmatprep.subr.mxu0 %v80_v1  ;;  %v181_v7 = vld [vmem:[#allocation7 + $0x78] sm:$0xff]  ;;  %v76_v9 = vld [vmem:[#allocation5 + $0x50] sm:$0xff]  ;;  %v75_v11 = vld [vmem:[#allocation5 + $0x48] sm:$0xff] }
  0x29   :  { %325 = vmatpush3.msra.mxu0 %v80_v1  ;;  %357 = vmatprep.subr.mxu1 %v181_v7  ;;  %v178_v12 = vld [vmem:[#allocation7 + $0x60] sm:$0xff]  ;;  %v177_v14 = vld [vmem:[#allocation7 + $0x58] sm:$0xff]  ;;  %v176_v16 = vld [vmem:[#allocation7 + $0x50] sm:$0xff] }
  0x2a   :  { %326 = vmatprep.subr.mxu0 %v79_v2  ;;  %354 = vmatprep.mubr.f32.mxu0 %v64_v6  ;;  %v74_v13 = vld [vmem:[#allocation5 + $0x40] sm:$0xff]  ;;  %v73_v15 = vld [vmem:[#allocation5 + $0x38] sm:$0xff]  ;;  %v72_v17 = vld [vmem:[#allocation5 + $0x30] sm:$0xff] }
  0x2b   :  { %327 = vmatpush3.msra.mxu0 %v79_v2  ;;  %358 = vmatpush3.msra.mxu1 %v181_v7  ;;  %v175_v18 = vld [vmem:[#allocation7 + $0x48] sm:$0xff]  ;;  %v174_v20 = vld [vmem:[#allocation7 + $0x40] sm:$0xff]  ;;  %v173_v22 = vld [vmem:[#allocation7 + $0x38] sm:$0xff] }
  0x2c   :  { %328 = vmatprep.subr.mxu0 %v78_v3  ;;  %359 = vmatprep.subr.mxu1 %v180_v8  ;;  %v71_v19 = vld [vmem:[#allocation5 + $0x28] sm:$0xff]  ;;  %v70_v21 = vld [vmem:[#allocation5 + $0x20] sm:$0xff]  ;;  %v69_v23 = vld [vmem:[#allocation5 + $0x18] sm:$0xff] }
  0x2d   :  { %329 = vmatpush3.msra.mxu0 %v78_v3  ;;  %360 = vmatpush3.msra.mxu1 %v180_v8  ;;  %v172_v24 = vld [vmem:[#allocation7 + $0x30] sm:$0xff]  ;;  %v171_v26 = vld [vmem:[#allocation7 + $0x28] sm:$0xff]  ;;  %v63_v28 = vld [vmem:[#allocation2 + $0x8] sm:$0xff] }
  0x2e   :  { %330 = vmatprep.subr.mxu0 %v77_v5  ;;  %361 = vmatprep.subr.mxu1 %v179_v10  ;;  %v68_v25 = vld [vmem:[#allocation5 + $0x10] sm:$0xff]  ;;  %v67_v27 = vld [vmem:[#allocation5 + $0x8] sm:$0xff]  ;;  %v170_v29 = vld [vmem:[#allocation7 + $0x20] sm:$0xff]  ;;  %v65_v31 = vmax.f32 %v63_v28, 0.0 }
  0x2f   :  { %331 = vmatpush3.msra.mxu0 %v77_v5  ;;  %362 = vmatpush3.msra.mxu1 %v179_v10  ;;  %v66_v30 = vld [vmem:[#allocation5] sm:$0xff]  ;;  %v169_v32 = vld [vmem:[#allocation7 + $0x18] sm:$0xff]  ;;  %v168_v33 = vld [vmem:[#allocation7 + $0x10] sm:$0xff] }
  0x30   :  { %332 = vmatprep.subr.mxu0 %v76_v9  ;;  %363 = vmatprep.subr.mxu1 %v178_v12  ;;  %v167_v34 = vld [vmem:[#allocation7 + $0x8] sm:$0xff]  ;;  %v166_v35 = vld [vmem:[#allocation7] sm:$0xff]  ;;  %v284_v36 = vld [vmem:[%s552_s2] ss:$0 sm:$0xff]  ;;  %s458_s2 = scalar_lea.vmem %s272_s12, 256 }
  0x31   :  { %333 = vmatpush3.msra.mxu0 %v76_v9  ;;  %364 = vmatpush3.msra.mxu1 %v178_v12  ;;  %v285_v43 = vld [vmem:[%s554_s4] ss:$0 sm:$0xff]  ;;  %p459_p1 = scmp.ne.s32.totalorder %s272_s12, %s458_s2  ;;  %p464_p3 = scmp.lt.s32.totalorder %s458_s2, %s458_s2 }
  0x32   :  { %334 = vmatprep.subr.mxu0 %v75_v11  ;;  %365 = vmatprep.subr.mxu1 %v177_v14 }
  0x33   :  { %335 = vmatpush3.msra.mxu0 %v75_v11  ;;  %366 = vmatpush3.msra.mxu1 %v177_v14  ;;  %p465_p4 = por %p464_p3, %p463_p2 }
  0x34   :  { %336 = vmatprep.subr.mxu0 %v74_v13  ;;  %367 = vmatprep.subr.mxu1 %v176_v16 }
  0x35   :  { %337 = vmatpush3.msra.mxu0 %v74_v13  ;;  %368 = vmatpush3.msra.mxu1 %v176_v16  ;;  %p466_p5 = pnand %p465_p4, %p459_p1 }
  0x36   :  { %338 = vmatprep.subr.mxu0 %v73_v15  ;;  %369 = vmatprep.subr.mxu1 %v175_v18 }
  0x37   :  { %339 = vmatpush3.msra.mxu0 %v73_v15  ;;  %370 = vmatpush3.msra.mxu1 %v175_v18 }
  0x38   :  { %340 = vmatprep.subr.mxu0 %v72_v17  ;;  %371 = vmatprep.subr.mxu1 %v174_v20 }
  0x39   :  { %341 = vmatpush3.msra.mxu0 %v72_v17  ;;  %372 = vmatpush3.msra.mxu1 %v174_v20 }
  0x3a   :  { %342 = vmatprep.subr.mxu0 %v71_v19  ;;  %373 = vmatprep.subr.mxu1 %v173_v22 }
  0x3b   :  { %343 = vmatpush3.msra.mxu0 %v71_v19  ;;  %374 = vmatpush3.msra.mxu1 %v173_v22 }
  0x3c   :  { %344 = vmatprep.subr.mxu0 %v70_v21  ;;  %375 = vmatprep.subr.mxu1 %v172_v24 }
  0x3d   :  { %345 = vmatpush3.msra.mxu0 %v70_v21  ;;  %376 = vmatpush3.msra.mxu1 %v172_v24 }
  0x3e   :  { %346 = vmatprep.subr.mxu0 %v69_v23  ;;  %377 = vmatprep.subr.mxu1 %v171_v26 }
  0x3f   :  { %347 = vmatpush3.msra.mxu0 %v69_v23  ;;  %378 = vmatpush3.msra.mxu1 %v171_v26 }
  0x40   :  { %348 = vmatprep.subr.mxu0 %v68_v25  ;;  %379 = vmatprep.subr.mxu1 %v170_v29 }
  0x41   :  { %349 = vmatpush3.msra.mxu0 %v68_v25  ;;  %380 = vmatpush3.msra.mxu1 %v170_v29 }
  0x42   :  { %350 = vmatprep.subr.mxu0 %v67_v27  ;;  %381 = vmatprep.subr.mxu1 %v169_v32 }
  0x43   :  { %351 = vmatpush3.msra.mxu0 %v67_v27  ;;  %382 = vmatpush3.msra.mxu1 %v169_v32 }
  0x44   :  { %352 = vmatprep.subr.mxu0 %v66_v30  ;;  %383 = vmatprep.subr.mxu1 %v168_v33 }
  0x45   :  { %353 = vmatpush3.msra.mxu0 %v66_v30  ;;  %384 = vmatpush3.msra.mxu1 %v168_v33 }
  0x46   :  { %355 = vmatmul.mubr.f32.vlgmr.msra.gmra.mxu0 %v65_v31  ;;  %385 = vmatprep.subr.mxu1 %v167_v34 }
  0x47   :  { %386 = vmatpush3.msra.mxu1 %v167_v34 }
  0x48   :  { %387 = vmatprep.subr.mxu1 %v166_v35 }
  0x49   :  { %388 = vmatpush3.msra.mxu1 %v166_v35 }
 0x106   :  { %v356_v37 = vpop.f32.mrf.mxu0 }
 0x107   :  { %v161_v38 = vadd.f32 %v356_v37, %v284_v36 }
 0x108   :  { %v155_v39 = vpop.f32.mrf.mxu0 }
 0x109   :  { %v156_v40 = vadd.f32 %v284_v36, %v155_v39  ;;  %v165_v42 = vmax.f32 %v161_v38, 0.0 }
 0x10b   :  { %v164_v41 = vmax.f32 %v156_v40, 0.0 }
 0x10d   :  { %389 = vmatprep.mubr.f32.mxu1 %v164_v41 }
 0x10e   :  { %390 = vmatmul.mubr.f32.vlgmr.msra.gmra.mxu1 %v165_v42 }
 0x1ce   :  { %v391_v44 = vpop.f32.mrf.mxu1 }
 0x1cf   :  { %v261_v45 = vadd.f32 %v391_v44, %v285_v43 }
 0x1d0   :  { %v255_v46 = vpop.f32.mrf.mxu1 }
 0x1d1   :  { %265 = vst [vmem:[#allocation8 + $0x8] sm:$0xff] %v261_v45  ;;  %v256_v47 = vadd.f32 %v285_v43, %v255_v46 }
 0x1d3   :  { %264 = vst [vmem:[#allocation8] sm:$0xff] %v256_v47 }
 0x1d4   :  { %469 = shalt.err (!%p466_p5)
}
 0x1d5   :  { %277 = dma.vmem_to_hbm [thread:$0]  %s272_s12, 256, %s555_s5, [#allocation4], %s486_s23, %s486_s23, %s487_s24  }
 0x1d6   :  { %482 = dma.done.wait [#allocation4], 256  }
 0x1d7   :  { %483 = vsyncadd [#allocation4], 4294967040 }
 0x1d8   :  { %281 = vsyncpa [#allocation3], 1 }
 0x1d9   :  { %282 = vsyncpa [#allocation6], 1 }
 0x1da   :  { %283 = vsyncpa [#allocation4], 1 }

</bundles_post_ra>
